<compile_context>
chip_gen: v7x
topology: tpu7x:2x2x1
jax: 0.10.0
libtpu: 0.0.40
codegen_flags: <defaults>
</compile_context>

<pallas_src>
import numpy as np
import jax
import jax.numpy as jnp
from jax import lax
from jax.experimental import pallas as pl
from jax.experimental.pallas import tpu as pltpu


# Explicit scoped-VMEM budget: well under v7x's 64 MiB physical ceiling, raises
# v5e's 16 MiB / v6e-v7x's 32 MiB default scoped limits for bigger tiles.
_VMEM_LIMIT = 48 * 1024 * 1024
_VMEM_WORKSET_BUDGET = 40 * 1024 * 1024


# ---------------------------------------------------------------------------
# Rotary position-embedding tables (mirrors RotaryPosEmbed2D.__init__).
# ---------------------------------------------------------------------------
def rotary_buffers(window_size, dim):
    """sin1/cos1/sin2/cos2 exactly as the module, flattened row-major over (Wh, Ww)."""
    Wh, Ww = window_size
    g0, g1 = np.meshgrid(np.arange(Wh), np.arange(Ww), indexing="ij")
    coords = np.stack([g0.reshape(-1), g1.reshape(-1)]).astype(np.float32)   # (2, N)
    half = dim // 2
    d1 = half // 2
    d2 = half - d1
    inv1 = 10000.0 ** (-(np.arange(d1, dtype=np.float32) / d1))
    inv2 = 10000.0 ** (-(np.arange(d2, dtype=np.float32) / d2))
    s1 = coords[0][:, None] * inv1                                           # (N, d1)
    s2 = coords[1][:, None] * inv2                                           # (N, d2)
    return np.sin(s1), np.cos(s1), np.sin(s2), np.cos(s2)


def rotary_half_tables(window_size, dim):
    """(N, dim//2) cos/sin tables.

    The module's 4-way split/cat forward is equivalent to
        out[:, :half] = x[:, :half] * cos - x[:, half:] * sin
        out[:, half:] = x[:, half:] * cos + x[:, :half] * sin
    with cos = [cos1, cos2], sin = [sin1, sin2] of width half = dim//2.
    """
    sin1, cos1, sin2, cos2 = rotary_buffers(window_size, dim)
    cos_h = np.concatenate([cos1, cos2], axis=-1)
    sin_h = np.concatenate([sin1, sin2], axis=-1)
    return jnp.asarray(cos_h, jnp.float32), jnp.asarray(sin_h, jnp.float32)


# ---------------------------------------------------------------------------
# Linear kernel: y = x @ w + b, row-tiled; weight block index is constant so it
# stays resident in VMEM across grid steps.
# ---------------------------------------------------------------------------
def _linear_kernel(x_ref, w_ref, b_ref, o_ref):
    acc = jnp.dot(x_ref[...], w_ref[...], preferred_element_type=jnp.float32)
    o_ref[...] = (acc + b_ref[...].astype(jnp.float32)).astype(o_ref.dtype)


def _round_up(x, m):
    return ((x + m - 1) // m) * m


def _pick_row_tile(M, K, NO, itemsize, budget=_VMEM_WORKSET_BUDGET):
    """Largest 8-aligned row tile whose double-buffered working set (plus the
    resident weight/bias buffers) fits the VMEM budget."""
    fixed = 2 * K * NO * itemsize + 2 * NO * 4           # weight + bias (x2 buffers)
    cap = _round_up(max(M, 1), 8)
    for cand in (1024, 512, 256, 128, 64, 32, 16, 8):
        tm = min(cand, cap)
        if fixed + 2 * tm * (K + NO) * itemsize <= budget:
            return tm
    # TODO(synk): for very large C (weight alone >> budget) add a second
    # "parallel" grid axis tiling the NO columns.
    return 8


def linear(x2d, w, b):
    """y = x2d @ w + b with a row-tiled Pallas matmul kernel."""
    M, K = x2d.shape
    NO = w.shape[1]
    itemsize = x2d.dtype.itemsize
    tm = _pick_row_tile(M, K, NO, itemsize)
    Mp = _round_up(M, tm)
    xp = x2d if Mp == M else jnp.pad(x2d, ((0, Mp - M), (0, 0)))

    out = pl.pallas_call(
        _linear_kernel,
        out_shape=jax.ShapeDtypeStruct((Mp, NO), x2d.dtype),
        grid=(Mp // tm,),
        in_specs=[
            pl.BlockSpec((tm, K), lambda i: (i, 0)),
            pl.BlockSpec((K, NO), lambda i: (0, 0)),     # constant index -> resident
            pl.BlockSpec((1, NO), lambda i: (0, 0)),
        ],
        out_specs=pl.BlockSpec((tm, NO), lambda i: (i, 0)),
        compiler_params=pltpu.CompilerParams(
            dimension_semantics=("parallel",),
            vmem_limit_bytes=_VMEM_LIMIT),
    )(xp, w, b.reshape(1, NO).astype(jnp.float32))
    return out if Mp == M else out[:M]


# ---------------------------------------------------------------------------
# Fused rotary + window attention kernel: Bb windows x all H heads per step.
# ---------------------------------------------------------------------------
def _pick_window_batch(B_, N, C, nW, itemsize, *, max_rows=1024,
                       budget=_VMEM_WORKSET_BUDGET):
    """Largest window batch Bb (divisor of B_) such that Bb*N stays within a
    sensible row count, the per-step working set fits the VMEM budget, the mask
    indexing stays expressible (Bb | nW or nW | Bb), and at least two grid
    steps remain (dual-TC balance on v7x) whenever B_ allows it."""
    best = 1
    for bb in range(1, B_ + 1):
        if B_ % bb:
            continue
        if nW is not None and (nW % bb != 0 and bb % nW != 0):
            continue
        if bb * N > max(max_rows, N):
            continue
        if B_ >= 2 and B_ // bb < 2:
            continue
        need = 2 * bb * N * 4 * C * itemsize             # qkv in + ctx out (2 bufs each)
        if nW is not None:
            mrows = bb if nW % bb == 0 else nW
            need += 2 * mrows * N * N * 4
        if need > budget:
            continue
        best = bb
    return best


def _make_attn_kernel(*, Bb, H, C, D, N, nW, mask_mode):
    half = D // 2

    def kernel(*refs):
        if mask_mode is None:
            qkv_ref, cos_q_ref, sin_q_ref, cos_k_ref, sin_k_ref, o_ref = refs
            mask_ref = None
        else:
            (qkv_ref, cos_q_ref, sin_q_ref, cos_k_ref, sin_k_ref,
             mask_ref, o_ref) = refs

        cdt = qkv_ref.dtype          # MXU operand dtype follows the activations (bf16/f32)

        cos_q = cos_q_ref[...]       # (N, half), already scaled by softmax scale
        sin_q = sin_q_ref[...]
        cos_k = cos_k_ref[...]       # (N, half), unscaled
        sin_k = sin_k_ref[...]

        if mask_ref is None:
            mbias = None
        elif mask_mode == "block":                       # nW % Bb == 0
            mbias = mask_ref[...]                        # (Bb, N, N)
        else:                                            # "tile": Bb % nW == 0
            m = mask_ref[...]                            # (nW, N, N)
            reps = Bb // nW
            mbias = m if reps == 1 else jnp.concatenate([m] * reps, axis=0)

        outs = []
        for h in range(H):                               # unrolled at trace time
            q0 = h * D
            k0 = C + h * D
            v0 = 2 * C + h * D
            q_lo = qkv_ref[:, :, q0:q0 + half].astype(jnp.float32)
            q_hi = qkv_ref[:, :, q0 + half:q0 + D].astype(jnp.float32)
            k_lo = qkv_ref[:, :, k0:k0 + half].astype(jnp.float32)
            k_hi = qkv_ref[:, :, k0 + half:k0 + D].astype(jnp.float32)
            v_h = qkv_ref[:, :, v0:v0 + D]               # stays in cdt for the MXU

            # RotaryPosEmbed2D (the q tables already carry the softmax scale).
            qr = jnp.concatenate([q_lo * cos_q - q_hi * sin_q,
                                  q_hi * cos_q + q_lo * sin_q],
                                 axis=-1).astype(cdt)    # (Bb, N, D)
            kr = jnp.concatenate([k_lo * cos_k - k_hi * sin_k,
                                  k_hi * cos_k + k_lo * sin_k],
                                 axis=-1).astype(cdt)    # (Bb, N, D)

            # One K=D contraction per head, batched over the Bb windows.
            logits = jnp.einsum("bnd,bmd->bnm", qr, kr,
                                preferred_element_type=jnp.float32)
            if mbias is not None:
                logits = logits + mbias

            mrow = jnp.max(logits, axis=-1, keepdims=True)
            p = jnp.exp(logits - mrow)
            denom = jnp.sum(p, axis=-1, keepdims=True)
            ctx = jnp.einsum("bnm,bmd->bnd", p.astype(cdt), v_h,
                             preferred_element_type=jnp.float32)
            # Normalization deferred after PV: (N, D) work + EUP reciprocal.
            ctx = ctx * pl.reciprocal(denom, approx=True)
            outs.append(ctx)

        # Single lane-dense (Bb, N, C) store, heads packed along the lane axis.
        o_ref[...] = jnp.concatenate(outs, axis=-1).astype(o_ref.dtype)

    return kernel


def window_attention(x, w_qkv, b_qkv, w_proj, b_proj, cos_half, sin_half, *,
                     num_heads, scale, mask=None):
    """Pallas implementation of WindowAttention.forward (eval mode)."""
    B_, N, C = x.shape
    H = num_heads
    D = C // H
    half = D // 2
    assert H * D == C and D % 2 == 0
    assert cos_half.shape == (N, half) and sin_half.shape == (N, half)

    dt = x.dtype
    itemsize = dt.itemsize

    # --- 1) qkv projection; output stays head-packed along lanes: (B_, N, 3C) ---
    qkv = linear(x.reshape(B_ * N, C), w_qkv.astype(dt), b_qkv)
    qkv = qkv.reshape(B_, N, 3 * C)                       # free reshape, no transpose

    nW = None if mask is None else int(mask.shape[0])
    if nW is not None:
        assert B_ % nW == 0
    Bb = _pick_window_batch(B_, N, C, nW, itemsize)

    # Fold the softmax scale into the q rotary tables at trace time.
    cos_q = (cos_half * scale).astype(jnp.float32)
    sin_q = (sin_half * scale).astype(jnp.float32)
    cos_k = cos_half.astype(jnp.float32)
    sin_k = sin_half.astype(jnp.float32)

    in_specs = [
        pl.BlockSpec((Bb, N, 3 * C), lambda i: (i, 0, 0)),
        pl.BlockSpec((N, half), lambda i: (0, 0)),
        pl.BlockSpec((N, half), lambda i: (0, 0)),
        pl.BlockSpec((N, half), lambda i: (0, 0)),
        pl.BlockSpec((N, half), lambda i: (0, 0)),
    ]
    args = [qkv, cos_q, sin_q, cos_k, sin_k]

    mask_mode = None
    if mask is not None:
        mask_f = mask.astype(jnp.float32)                 # original (nW, N, N), never tiled
        if nW % Bb == 0:
            mask_mode = "block"
            n_mask_blocks = nW // Bb
            in_specs.append(
                pl.BlockSpec((Bb, N, N), lambda i: (i % n_mask_blocks, 0, 0)))
        else:                                             # Bb % nW == 0 by construction
            mask_mode = "tile"
            in_specs.append(pl.BlockSpec((nW, N, N), lambda i: (0, 0, 0)))
        args.append(mask_f)

    kernel = _make_attn_kernel(Bb=Bb, H=H, C=C, D=D, N=N, nW=nW,
                               mask_mode=mask_mode)

    # --- 2) fused rotary + attention, output directly in (B_, N, C) layout ---
    ctx = pl.pallas_call(
        kernel,
        out_shape=jax.ShapeDtypeStruct((B_, N, C), dt),
        grid=(B_ // Bb,),
        in_specs=in_specs,
        out_specs=pl.BlockSpec((Bb, N, C), lambda i: (i, 0, 0)),
        compiler_params=pltpu.CompilerParams(
            dimension_semantics=("parallel",),
            vmem_limit_bytes=_VMEM_LIMIT),
    )(*args)

    # --- 3) output projection (only free reshapes, no transpose) ---
    out = linear(ctx.reshape(B_ * N, C), w_proj.astype(dt), b_proj)
    return out.reshape(B_, N, C)


# ---------------------------------------------------------------------------
# Pure-JAX reference mirroring the PyTorch module exactly.
# ---------------------------------------------------------------------------
def _rotary_ref(x, bufs):
    sin1, cos1, sin2, cos2 = bufs
    d1, d2 = sin1.shape[-1], sin2.shape[-1]
    x11 = x[..., :d1]
    x21 = x[..., d1:d1 + d2]
    x12 = x[..., d1 + d2:2 * d1 + d2]
    x22 = x[..., 2 * d1 + d2:]
    return jnp.concatenate([
        x11 * cos1 - x12 * sin1,
        x21 * cos2 - x22 * sin2,
        x12 * cos1 + x11 * sin1,
        x22 * cos2 + x21 * sin2,
    ], axis=-1)


def window_attention_ref(x, w_qkv, b_qkv, w_proj, b_proj, rot_bufs, *,
                         num_heads, scale, mask=None):
    B_, N, C = x.shape
    H, D = num_heads, C // num_heads
    hp = lax.Precision.HIGHEST
    bufs = tuple(jnp.asarray(b, jnp.float32) for b in rot_bufs)
    qkv = jnp.einsum("bnc,cd->bnd", x, w_qkv, precision=hp) + b_qkv
    qkv = qkv.reshape(B_, N, 3, H, D).transpose(2, 0, 3, 1, 4)
    q, k, v = qkv[0], qkv[1], qkv[2]
    q = _rotary_ref(q, bufs) * scale
    k = _rotary_ref(k, bufs)
    attn = jnp.einsum("bhnd,bhmd->bhnm", q, k, precision=hp)
    if mask is not None:
        nW = mask.shape[0]
        attn = attn.reshape(B_ // nW, nW, H, N, N) + mask[None, :, None]
        attn = attn.reshape(B_, H, N, N)
    attn = jax.nn.softmax(attn, axis=-1)
    out = jnp.einsum("bhnm,bhmd->bhnd", attn, v, precision=hp)
    out = out.transpose(0, 2, 1, 3).reshape(B_, N, C)
    return jnp.einsum("bnc,cd->bnd", out, w_proj, precision=hp) + b_proj


if __name__ == "__main__":
    # 4 windows, 8x8 window (N=64), dim=64, 2 heads.
    B_, num_heads = 4, 2
    window_size = (8, 8)
    N = window_size[0] * window_size[1]
    C = 64
    D = C // num_heads
    scale = D ** (-0.5)          # config.qk_scale = None -> head_dim ** -0.5

    key = jax.random.PRNGKey(0)
    kx, k1, k2, k3, k4 = jax.random.split(key, 5)
    x = jax.random.normal(kx, (B_, N, C), dtype=jnp.float32)
    w_qkv = jax.random.normal(k1, (C, 3 * C), dtype=jnp.float32) * (C ** -0.5)
    b_qkv = jax.random.normal(k2, (3 * C,), dtype=jnp.float32) * 0.02
    w_proj = jax.random.normal(k3, (C, C), dtype=jnp.float32) * (C ** -0.5)
    b_proj = jax.random.normal(k4, (C,), dtype=jnp.float32) * 0.02

    rot_bufs = rotary_buffers(window_size, D)
    cos_h, sin_h = rotary_half_tables(window_size, D)

    # Swin-style additive mask (0 / -100), nW = 2 windows, B_ // nW = 2.
    nW = 2
    seg = jnp.arange(N) // (N // 2)
    blk = jnp.where(seg[:, None] == seg[None, :], 0.0, -100.0).astype(jnp.float32)
    mask = jnp.stack([jnp.zeros((N, N), jnp.float32), blk])            # (nW, N, N)

    tol = dict(rtol=2e-2, atol=2e-2)

    # --- f32, mask=None path ---
    out0 = jax.block_until_ready(
        window_attention(x, w_qkv, b_qkv, w_proj, b_proj, cos_h, sin_h,
                         num_heads=num_heads, scale=scale, mask=None))
    ref0 = window_attention_ref(x, w_qkv, b_qkv, w_proj, b_proj, rot_bufs,
                                num_heads=num_heads, scale=scale, mask=None)
    np.testing.assert_allclose(np.asarray(out0), np.asarray(ref0), **tol)

    # --- f32, masked path ---
    out1 = jax.block_until_ready(
        window_attention(x, w_qkv, b_qkv, w_proj, b_proj, cos_h, sin_h,
                         num_heads=num_heads, scale=scale, mask=mask))
    ref1 = window_attention_ref(x, w_qkv, b_qkv, w_proj, b_proj, rot_bufs,
                                num_heads=num_heads, scale=scale, mask=mask)
    np.testing.assert_allclose(np.asarray(out1), np.asarray(ref1), **tol)

    # --- bf16 fast path (bf16 MXU operands, f32 accumulation); loose check ---
    out_bf = jax.block_until_ready(
        window_attention(x.astype(jnp.bfloat16), w_qkv, b_qkv, w_proj, b_proj,
                         cos_h, sin_h, num_heads=num_heads, scale=scale,
                         mask=mask))
    np.testing.assert_allclose(np.asarray(out_bf).astype(np.float32),
                               np.asarray(ref1), rtol=2e-1, atol=2e-1)

    print("KERNEL_OK")
</pallas_src>

<mosaic_0001>
module attributes {stable_mosaic.version = 11 : i64} {
  func.func @_linear_kernel(%arg0: i32, %arg1: memref<256x64xf32, #tpu.memory_space<vmem>>, %arg2: memref<64x192xf32, #tpu.memory_space<vmem>>, %arg3: memref<1x192xf32, #tpu.memory_space<vmem>>, %arg4: memref<256x192xf32, #tpu.memory_space<vmem>>) attributes {dimension_semantics = [#tpu.dimension_semantics<parallel>], iteration_bounds = array<i64: 1>, scalar_prefetch = 0 : i64, scratch_operands = 0 : i64, tpu.core_type = #tpu.core_type<tc>, window_params = [{transform_indices = @transform_0, window_bounds = array<i64: 256, 64>}, {pipeline_mode = #tpu.pipeline_mode<synchronous>, transform_indices = @transform_1, window_bounds = array<i64: 64, 192>}, {pipeline_mode = #tpu.pipeline_mode<synchronous>, transform_indices = @transform_2, window_bounds = array<i64: 1, 192>}, {transform_indices = @transform_3, window_bounds = array<i64: 256, 192>}]} {
    %c0 = arith.constant 0 : index
    %c0_0 = arith.constant 0 : index
    %0 = vector.load %arg1[%c0, %c0_0] : memref<256x64xf32, #tpu.memory_space<vmem>>, vector<256x64xf32>
    %c0_1 = arith.constant 0 : index
    %c0_2 = arith.constant 0 : index
    %1 = vector.load %arg2[%c0_1, %c0_2] : memref<64x192xf32, #tpu.memory_space<vmem>>, vector<64x192xf32>
    %cst = arith.constant dense<0.000000e+00> : vector<256x192xf32>
    %2 = tpu.matmul %0, %1, %cst {dimension_numbers = #tpu.dot_dimension_numbers<[1], [0], [0], [1], [0, 0, 1, 1], [], []>} : vector<256x64xf32>, vector<64x192xf32>, vector<256x192xf32> -> vector<256x192xf32>
    %c0_3 = arith.constant 0 : index
    %c0_4 = arith.constant 0 : index
    %3 = vector.load %arg3[%c0_3, %c0_4] : memref<1x192xf32, #tpu.memory_space<vmem>>, vector<1x192xf32>
    %4 = vector.broadcast %3 : vector<1x192xf32> to vector<256x192xf32>
    %5 = arith.addf %2, %4 : vector<256x192xf32>
    %c0_5 = arith.constant 0 : index
    %c0_6 = arith.constant 0 : index
    %6 = vector.load %arg4[%c0_5, %c0_6] : memref<256x192xf32, #tpu.memory_space<vmem>>, vector<256x192xf32>
    tpu.vector_store %arg4[%c0_5, %c0_6], %5 {strides = array<i32>} : memref<256x192xf32, #tpu.memory_space<vmem>>, vector<256x192xf32>,
    return
  }
  func.func @transform_0(%arg0: i32) -> (i32, i32) {
    %c0_i32 = arith.constant 0 : i32
    %c0_i32_0 = arith.constant 0 : i32
    return %arg0, %c0_i32 : i32, i32
  }
  func.func @transform_1(%arg0: i32) -> (i32, i32) {
    %c0_i32 = arith.constant 0 : i32
    %c0_i32_0 = arith.constant 0 : i32
    %c0_i32_1 = arith.constant 0 : i32
    return %c0_i32, %c0_i32_0 : i32, i32
  }
  func.func @transform_2(%arg0: i32) -> (i32, i32) {
    %c0_i32 = arith.constant 0 : i32
    %c0_i32_0 = arith.constant 0 : i32
    %c0_i32_1 = arith.constant 0 : i32
    return %c0_i32, %c0_i32_0 : i32, i32
  }
  func.func @transform_3(%arg0: i32) -> (i32, i32) {
    %c0_i32 = arith.constant 0 : i32
    %c0_i32_0 = arith.constant 0 : i32
    return %arg0, %c0_i32 : i32, i32
  }
}

</mosaic_0001>

<bundles_post_ra>
// kernel: tpu_custom_call.1
= control target key start
LH: loop header
LB: loop body
LE: loop exit
PB: predicated region body
PF: predicated region fallthrough
CT: control target
= control target key end

     0   :  { %v553_v3 = vmov 0.0   ;;  %vm74_vm0 = vcmask 523264   ;;  %v64_v57 = vlaneseq  ;;  %s1077_s1 = inlined_call_operand.vmem [shape: f32[64,192], index: 1, kind: input, shape index: {}]   ;;  %s1078_s0 = inlined_call_operand.vmem [shape: f32[256,64], index: 0, kind: input, shape index: {}]   ;;  %s1079_s2 = inlined_call_operand.vmem [shape: f32[1,192], index: 2, kind: input, shape index: {}]   ;;  %s1080_s3 = inlined_call_operand.vmem [shape: f32[256,192], index: 3, kind: output, shape index: {}]  }
   0x1   :  { %v47_v0 = vld [vmem:[%s1077_s1 + $0x8] sm:$0xff]  ;;  %v49_v1 = vld [vmem:[%s1077_s1 + $0x18] sm:$0xff]  ;;  %v46_v2 = vld [vmem:[%s1077_s1] sm:$0xff]  ;;  %235 = vmatprep.mubr.f32.mxu0 %v553_v3  ;;  %331 = vmatprep.mubr.f32.mxu1 %v553_v3 }
   0x2   :  { %v528_v4 = vpack.c.bf16 %v49_v1, %v47_v0  ;;  %v48_v5 = vld [vmem:[%s1077_s1 + $0x10] sm:$0xff]  ;;  %v51_v6 = vld [vmem:[%s1077_s1 + $0x28] sm:$0xff]  ;;  %v53_v7 = vld [vmem:[%s1077_s1 + $0x38] sm:$0xff]  ;;  %v65_v58 = vshrl.u32 %v64_v57, 7 }
   0x3   :  { %v530_v8 = vpack.c.bf16 %v48_v5, %v46_v2  ;;  %v532_v9 = vpack.c.bf16 %v53_v7, %v51_v6  ;;  %v50_v10 = vld [vmem:[%s1077_s1 + $0x20] sm:$0xff]  ;;  %v52_v11 = vld [vmem:[%s1077_s1 + $0x30] sm:$0xff]  ;;  %v55_v12 = vld [vmem:[%s1077_s1 + $0x48] sm:$0xff] }
   0x4   :  { %529 = vmatprep.subr.bf16.mxu0 %v528_v4  ;;  %544 = vmatprep.subr.bf16.mxu1 %v528_v4  ;;  %v57_v13 = vld [vmem:[%s1077_s1 + $0x58] sm:$0xff]  ;;  %v534_v14 = vpack.c.bf16 %v52_v11, %v50_v10  ;;  %v54_v16 = vld [vmem:[%s1077_s1 + $0x40] sm:$0xff]  ;;  %v56_v17 = vld [vmem:[%s1077_s1 + $0x50] sm:$0xff]  ;;  %v66_v59 = vsub.s32 0, %v65_v58  ;;  %v70_v61 = vsub.s32 1, %v65_v58 }
   0x5   :  { %531 = vmatpush1.bf16.msra.mxu0 %v530_v8  ;;  %548 = vmatpush1.bf16.msra.mxu1 %v530_v8  ;;  %v536_v15 = vpack.c.bf16 %v57_v13, %v55_v12  ;;  %v59_v18 = vld [vmem:[%s1077_s1 + $0x68] sm:$0xff]  ;;  %v61_v19 = vld [vmem:[%s1077_s1 + $0x78] sm:$0xff]  ;;  %v538_v20 = vpack.c.bf16 %v56_v17, %v54_v16  ;;  %v58_v22 = vld [vmem:[%s1077_s1 + $0x60] sm:$0xff] }
   0x6   :  { %533 = vmatprep.subr.bf16.mxu0 %v532_v9  ;;  %545 = vmatprep.subr.bf16.mxu1 %v532_v9  ;;  %v540_v21 = vpack.c.bf16 %v61_v19, %v59_v18  ;;  %v60_v23 = vld [vmem:[%s1077_s1 + $0x70] sm:$0xff]  ;;  %v14_v25 = vld [vmem:[%s1078_s0] sm:$0xff]  ;;  %v15_v27 = vld [vmem:[%s1078_s0 + $0x8] sm:$0xff] }
   0x7   :  { %v542_v24 = vpack.c.bf16 %v60_v23, %v58_v22  ;;  %v30_v26 = vld [vmem:[%s1078_s0 + $0x80] sm:$0xff]  ;;  %v31_v28 = vld [vmem:[%s1078_s0 + $0x88] sm:$0xff]  ;;  %v16_v29 = vld [vmem:[%s1078_s0 + $0x10] sm:$0xff] }
   0x8   :  { %v32_v30 = vld [vmem:[%s1078_s0 + $0x90] sm:$0xff]  ;;  %v17_v31 = vld [vmem:[%s1078_s0 + $0x18] sm:$0xff]  ;;  %v18_v33 = vld [vmem:[%s1078_s0 + $0x20] sm:$0xff] }
   0x9   :  { %535 = vmatpush1.bf16.msra.mxu0 %v534_v14  ;;  %549 = vmatpush1.bf16.msra.mxu1 %v534_v14  ;;  %v33_v32 = vld [vmem:[%s1078_s0 + $0x98] sm:$0xff]  ;;  %v34_v34 = vld [vmem:[%s1078_s0 + $0xa0] sm:$0xff]  ;;  %v19_v35 = vld [vmem:[%s1078_s0 + $0x28] sm:$0xff] }
   0xa   :  { %537 = vmatprep.subr.bf16.mxu0 %v536_v15  ;;  %546 = vmatprep.subr.bf16.mxu1 %v536_v15  ;;  %v35_v36 = vld [vmem:[%s1078_s0 + $0xa8] sm:$0xff]  ;;  %v20_v37 = vld [vmem:[%s1078_s0 + $0x30] sm:$0xff]  ;;  %v21_v39 = vld [vmem:[%s1078_s0 + $0x38] sm:$0xff] }
   0xb   :  { %v36_v38 = vld [vmem:[%s1078_s0 + $0xb0] sm:$0xff]  ;;  %v37_v40 = vld [vmem:[%s1078_s0 + $0xb8] sm:$0xff]  ;;  %v22_v41 = vld [vmem:[%s1078_s0 + $0x40] sm:$0xff] }
   0xc   :  { %v38_v42 = vld [vmem:[%s1078_s0 + $0xc0] sm:$0xff]  ;;  %v23_v43 = vld [vmem:[%s1078_s0 + $0x48] sm:$0xff]  ;;  %v24_v45 = vld [vmem:[%s1078_s0 + $0x50] sm:$0xff] }
   0xd   :  { %539 = vmatpush1.bf16.msra.mxu0 %v538_v20  ;;  %550 = vmatpush1.bf16.msra.mxu1 %v538_v20  ;;  %v39_v44 = vld [vmem:[%s1078_s0 + $0xc8] sm:$0xff]  ;;  %v40_v46 = vld [vmem:[%s1078_s0 + $0xd0] sm:$0xff]  ;;  %v25_v47 = vld [vmem:[%s1078_s0 + $0x58] sm:$0xff] }
   0xe   :  { %541 = vmatprep.subr.bf16.mxu0 %v540_v21  ;;  %547 = vmatprep.subr.bf16.mxu1 %v540_v21  ;;  %v41_v48 = vld [vmem:[%s1078_s0 + $0xd8] sm:$0xff]  ;;  %v26_v49 = vld [vmem:[%s1078_s0 + $0x60] sm:$0xff]  ;;  %v27_v51 = vld [vmem:[%s1078_s0 + $0x68] sm:$0xff] }
   0xf   :  { %v42_v50 = vld [vmem:[%s1078_s0 + $0xe0] sm:$0xff]  ;;  %v43_v52 = vld [vmem:[%s1078_s0 + $0xe8] sm:$0xff]  ;;  %v28_v53 = vld [vmem:[%s1078_s0 + $0x70] sm:$0xff] }
  0x10   :  { %v44_v54 = vld [vmem:[%s1078_s0 + $0xf0] sm:$0xff]  ;;  %v29_v55 = vld [vmem:[%s1078_s0 + $0x78] sm:$0xff]  ;;  %v62_v60 = vld [vmem:[%s1079_s2] sm:$0x3] }
  0x11   :  { %543 = vmatpush1.bf16.msra.mxu0 %v542_v24  ;;  %551 = vmatpush1.bf16.msra.mxu1 %v542_v24  ;;  %v45_v56 = vld [vmem:[%s1078_s0 + $0xf8] sm:$0xff]  ;;  %v785_v62 = vrot.slane %v62_v60, %v66_v59  ;;  %v787_v63 = vrot.slane %v62_v60, %v70_v61 }
  0x14   :  { %496 = vmatmul.mubr.msk.f32.vlgmr.msra.gmra.mrb[0].mxu0 %vm74_vm0, %v14_v25  ;;  %512 = vmatmul.mubr.msk.f32.vlgmr.msra.gmra.mrb[0].mxu1 %vm74_vm0, %v30_v26 }
  0x15   :  { %241 = vmatprep.mubr.f32.mxu0 %v553_v3  ;;  %337 = vmatprep.mubr.f32.mxu1 %v553_v3 }
  0x18   :  { %497 = vmatmul.mubr.msk.f32.gmra.mrb[2].mxu0 %vm74_vm0, %v15_v27  ;;  %513 = vmatmul.mubr.msk.f32.gmra.mrb[2].mxu1 %vm74_vm0, %v31_v28 }
  0x19   :  { %247 = vmatprep.mubr.f32.mxu0 %v553_v3  ;;  %343 = vmatprep.mubr.f32.mxu1 %v553_v3 }
  0x1c   :  { %498 = vmatmul.mubr.msk.f32.gmra.mrb[4].mxu0 %vm74_vm0, %v16_v29  ;;  %514 = vmatmul.mubr.msk.f32.gmra.mrb[4].mxu1 %vm74_vm0, %v32_v30 }
  0x1d   :  { %253 = vmatprep.mubr.f32.mxu0 %v553_v3  ;;  %349 = vmatprep.mubr.f32.mxu1 %v553_v3 }
  0x20   :  { %499 = vmatmul.mubr.msk.f32.gmra.mrb[6].mxu0 %vm74_vm0, %v17_v31  ;;  %515 = vmatmul.mubr.msk.f32.gmra.mrb[6].mxu1 %vm74_vm0, %v33_v32 }
  0x21   :  { %259 = vmatprep.mubr.f32.mxu0 %v553_v3  ;;  %355 = vmatprep.mubr.f32.mxu1 %v553_v3 }
  0x24   :  { %500 = vmatmul.mubr.msk.f32.gmra.mrb[8].mxu0 %vm74_vm0, %v18_v33  ;;  %516 = vmatmul.mubr.msk.f32.gmra.mrb[8].mxu1 %vm74_vm0, %v34_v34 }
  0x25   :  { %265 = vmatprep.mubr.f32.mxu0 %v553_v3  ;;  %361 = vmatprep.mubr.f32.mxu1 %v553_v3 }
  0x28   :  { %501 = vmatmul.mubr.msk.f32.gmra.mrb[10].mxu0 %vm74_vm0, %v19_v35  ;;  %517 = vmatmul.mubr.msk.f32.gmra.mrb[10].mxu1 %vm74_vm0, %v35_v36 }
  0x29   :  { %271 = vmatprep.mubr.f32.mxu0 %v553_v3  ;;  %367 = vmatprep.mubr.f32.mxu1 %v553_v3 }
  0x2c   :  { %502 = vmatmul.mubr.msk.f32.gmra.mrb[12].mxu0 %vm74_vm0, %v20_v37  ;;  %518 = vmatmul.mubr.msk.f32.gmra.mrb[12].mxu1 %vm74_vm0, %v36_v38 }
  0x2d   :  { %277 = vmatprep.mubr.f32.mxu0 %v553_v3  ;;  %373 = vmatprep.mubr.f32.mxu1 %v553_v3 }
  0x30   :  { %503 = vmatmul.mubr.msk.f32.gmra.mrb[14].mxu0 %vm74_vm0, %v21_v39  ;;  %519 = vmatmul.mubr.msk.f32.gmra.mrb[14].mxu1 %vm74_vm0, %v37_v40 }
  0x31   :  { %283 = vmatprep.mubr.f32.mxu0 %v553_v3  ;;  %379 = vmatprep.mubr.f32.mxu1 %v553_v3 }
  0x34   :  { %504 = vmatmul.mubr.msk.f32.gmra.mrb[16].mxu0 %vm74_vm0, %v22_v41  ;;  %520 = vmatmul.mubr.msk.f32.gmra.mrb[16].mxu1 %vm74_vm0, %v38_v42 }
  0x35   :  { %289 = vmatprep.mubr.f32.mxu0 %v553_v3  ;;  %385 = vmatprep.mubr.f32.mxu1 %v553_v3 }
  0x38   :  { %505 = vmatmul.mubr.msk.f32.gmra.mrb[18].mxu0 %vm74_vm0, %v23_v43  ;;  %521 = vmatmul.mubr.msk.f32.gmra.mrb[18].mxu1 %vm74_vm0, %v39_v44 }
  0x39   :  { %295 = vmatprep.mubr.f32.mxu0 %v553_v3  ;;  %391 = vmatprep.mubr.f32.mxu1 %v553_v3 }
  0x3c   :  { %506 = vmatmul.mubr.msk.f32.gmra.mrb[20].mxu0 %vm74_vm0, %v24_v45  ;;  %522 = vmatmul.mubr.msk.f32.gmra.mrb[20].mxu1 %vm74_vm0, %v40_v46 }
  0x3d   :  { %301 = vmatprep.mubr.f32.mxu0 %v553_v3  ;;  %397 = vmatprep.mubr.f32.mxu1 %v553_v3 }
  0x40   :  { %507 = vmatmul.mubr.msk.f32.gmra.mrb[22].mxu0 %vm74_vm0, %v25_v47  ;;  %523 = vmatmul.mubr.msk.f32.gmra.mrb[22].mxu1 %vm74_vm0, %v41_v48 }
  0x41   :  { %307 = vmatprep.mubr.f32.mxu0 %v553_v3  ;;  %403 = vmatprep.mubr.f32.mxu1 %v553_v3 }
  0x44   :  { %508 = vmatmul.mubr.msk.f32.gmra.mrb[24].mxu0 %vm74_vm0, %v26_v49  ;;  %524 = vmatmul.mubr.msk.f32.gmra.mrb[24].mxu1 %vm74_vm0, %v42_v50 }
  0x45   :  { %313 = vmatprep.mubr.f32.mxu0 %v553_v3  ;;  %409 = vmatprep.mubr.f32.mxu1 %v553_v3 }
  0x48   :  { %509 = vmatmul.mubr.msk.f32.gmra.mrb[26].mxu0 %vm74_vm0, %v27_v51  ;;  %525 = vmatmul.mubr.msk.f32.gmra.mrb[26].mxu1 %vm74_vm0, %v43_v52 }
  0x49   :  { %319 = vmatprep.mubr.f32.mxu0 %v553_v3  ;;  %415 = vmatprep.mubr.f32.mxu1 %v553_v3 }
  0x4c   :  { %510 = vmatmul.mubr.msk.f32.gmra.mrb[28].mxu0 %vm74_vm0, %v28_v53  ;;  %526 = vmatmul.mubr.msk.f32.gmra.mrb[28].mxu1 %vm74_vm0, %v44_v54 }
  0x4d   :  { %325 = vmatprep.mubr.f32.mxu0 %v553_v3  ;;  %421 = vmatprep.mubr.f32.mxu1 %v553_v3 }
  0x50   :  { %511 = vmatmul.mubr.msk.f32.gmra.mrb[30].mxu0 %vm74_vm0, %v29_v55  ;;  %527 = vmatmul.mubr.msk.f32.gmra.mrb[30].mxu1 %vm74_vm0, %v45_v56 }
  0xe7   :  { %v237_v0 = vpop.f32.mrb[0].mxu0  ;;  %v333_v1 = vpop.f32.mrb[0].mxu1 }
  0xe8   :  { %v238_v2 = vadd.f32 %v237_v0, %v785_v62  ;;  %v334_v3 = vadd.f32 %v333_v1, %v785_v62  ;;  %v239_v4 = vpop.f32.mrb[1].mxu0  ;;  %v335_v5 = vpop.f32.mrb[1].mxu1 }
  0xe9   :  { %v240_v6 = vadd.f32 %v239_v4, %v787_v63  ;;  %v336_v7 = vadd.f32 %v335_v5, %v787_v63 }
  0xea   :  { %428 = vst [vmem:[%s1080_s3] sm:$0xff] %v238_v2  ;;  %460 = vst [vmem:[%s1080_s3 + $0x100] sm:$0xff] %v334_v3 }
  0xeb   :  { %429 = vst.msk [vmem:[%s1080_s3 + $0x8] sm:$0xff] %vm74_vm0, %v240_v6  ;;  %461 = vst.msk [vmem:[%s1080_s3 + $0x108] sm:$0xff] %vm74_vm0, %v336_v7  ;;  %v243_v8 = vpop.f32.mrb[2].mxu0  ;;  %v339_v9 = vpop.f32.mrb[2].mxu1 }
  0xec   :  { %v244_v10 = vadd.f32 %v243_v8, %v785_v62  ;;  %v340_v11 = vadd.f32 %v339_v9, %v785_v62  ;;  %v245_v12 = vpop.f32.mrb[3].mxu0  ;;  %v341_v13 = vpop.f32.mrb[3].mxu1 }
  0xed   :  { %v246_v14 = vadd.f32 %v245_v12, %v787_v63  ;;  %v342_v15 = vadd.f32 %v341_v13, %v787_v63 }
  0xee   :  { %430 = vst [vmem:[%s1080_s3 + $0x10] sm:$0xff] %v244_v10  ;;  %462 = vst [vmem:[%s1080_s3 + $0x110] sm:$0xff] %v340_v11 }
  0xef   :  { %431 = vst.msk [vmem:[%s1080_s3 + $0x18] sm:$0xff] %vm74_vm0, %v246_v14  ;;  %463 = vst.msk [vmem:[%s1080_s3 + $0x118] sm:$0xff] %vm74_vm0, %v342_v15  ;;  %v249_v16 = vpop.f32.mrb[4].mxu0  ;;  %v345_v17 = vpop.f32.mrb[4].mxu1 }
  0xf0   :  { %v250_v18 = vadd.f32 %v249_v16, %v785_v62  ;;  %v346_v19 = vadd.f32 %v345_v17, %v785_v62  ;;  %v251_v20 = vpop.f32.mrb[5].mxu0  ;;  %v347_v21 = vpop.f32.mrb[5].mxu1 }
  0xf1   :  { %v252_v22 = vadd.f32 %v251_v20, %v787_v63  ;;  %v348_v23 = vadd.f32 %v347_v21, %v787_v63 }
  0xf2   :  { %432 = vst [vmem:[%s1080_s3 + $0x20] sm:$0xff] %v250_v18  ;;  %464 = vst [vmem:[%s1080_s3 + $0x120] sm:$0xff] %v346_v19 }
  0xf3   :  { %433 = vst.msk [vmem:[%s1080_s3 + $0x28] sm:$0xff] %vm74_vm0, %v252_v22  ;;  %465 = vst.msk [vmem:[%s1080_s3 + $0x128] sm:$0xff] %vm74_vm0, %v348_v23  ;;  %v255_v24 = vpop.f32.mrb[6].mxu0  ;;  %v351_v25 = vpop.f32.mrb[6].mxu1 }
  0xf4   :  { %v256_v26 = vadd.f32 %v255_v24, %v785_v62  ;;  %v352_v27 = vadd.f32 %v351_v25, %v785_v62  ;;  %v257_v28 = vpop.f32.mrb[7].mxu0  ;;  %v353_v29 = vpop.f32.mrb[7].mxu1 }
  0xf5   :  { %v258_v30 = vadd.f32 %v257_v28, %v787_v63  ;;  %v354_v31 = vadd.f32 %v353_v29, %v787_v63 }
  0xf6   :  { %434 = vst [vmem:[%s1080_s3 + $0x30] sm:$0xff] %v256_v26  ;;  %466 = vst [vmem:[%s1080_s3 + $0x130] sm:$0xff] %v352_v27 }
  0xf7   :  { %435 = vst.msk [vmem:[%s1080_s3 + $0x38] sm:$0xff] %vm74_vm0, %v258_v30  ;;  %467 = vst.msk [vmem:[%s1080_s3 + $0x138] sm:$0xff] %vm74_vm0, %v354_v31  ;;  %v261_v32 = vpop.f32.mrb[8].mxu0  ;;  %v357_v33 = vpop.f32.mrb[8].mxu1 }
  0xf8   :  { %v262_v34 = vadd.f32 %v261_v32, %v785_v62  ;;  %v358_v35 = vadd.f32 %v357_v33, %v785_v62  ;;  %v263_v36 = vpop.f32.mrb[9].mxu0  ;;  %v359_v37 = vpop.f32.mrb[9].mxu1 }
  0xf9   :  { %v264_v38 = vadd.f32 %v263_v36, %v787_v63  ;;  %v360_v39 = vadd.f32 %v359_v37, %v787_v63 }
  0xfa   :  { %436 = vst [vmem:[%s1080_s3 + $0x40] sm:$0xff] %v262_v34  ;;  %468 = vst [vmem:[%s1080_s3 + $0x140] sm:$0xff] %v358_v35 }
  0xfb   :  { %437 = vst.msk [vmem:[%s1080_s3 + $0x48] sm:$0xff] %vm74_vm0, %v264_v38  ;;  %469 = vst.msk [vmem:[%s1080_s3 + $0x148] sm:$0xff] %vm74_vm0, %v360_v39  ;;  %v267_v40 = vpop.f32.mrb[10].mxu0  ;;  %v363_v41 = vpop.f32.mrb[10].mxu1 }
  0xfc   :  { %v268_v42 = vadd.f32 %v267_v40, %v785_v62  ;;  %v364_v43 = vadd.f32 %v363_v41, %v785_v62  ;;  %v269_v44 = vpop.f32.mrb[11].mxu0  ;;  %v365_v45 = vpop.f32.mrb[11].mxu1 }
  0xfd   :  { %v270_v46 = vadd.f32 %v269_v44, %v787_v63  ;;  %v366_v47 = vadd.f32 %v365_v45, %v787_v63 }
  0xfe   :  { %438 = vst [vmem:[%s1080_s3 + $0x50] sm:$0xff] %v268_v42  ;;  %470 = vst [vmem:[%s1080_s3 + $0x150] sm:$0xff] %v364_v43 }
  0xff   :  { %439 = vst.msk [vmem:[%s1080_s3 + $0x58] sm:$0xff] %vm74_vm0, %v270_v46  ;;  %471 = vst.msk [vmem:[%s1080_s3 + $0x158] sm:$0xff] %vm74_vm0, %v366_v47  ;;  %v273_v48 = vpop.f32.mrb[12].mxu0  ;;  %v369_v49 = vpop.f32.mrb[12].mxu1 }
 0x100   :  { %v274_v50 = vadd.f32 %v273_v48, %v785_v62  ;;  %v370_v51 = vadd.f32 %v369_v49, %v785_v62  ;;  %v275_v52 = vpop.f32.mrb[13].mxu0  ;;  %v371_v53 = vpop.f32.mrb[13].mxu1 }
 0x101   :  { %v276_v54 = vadd.f32 %v275_v52, %v787_v63  ;;  %v372_v55 = vadd.f32 %v371_v53, %v787_v63 }
 0x102   :  { %440 = vst [vmem:[%s1080_s3 + $0x60] sm:$0xff] %v274_v50  ;;  %472 = vst [vmem:[%s1080_s3 + $0x160] sm:$0xff] %v370_v51 }
 0x103   :  { %441 = vst.msk [vmem:[%s1080_s3 + $0x68] sm:$0xff] %vm74_vm0, %v276_v54  ;;  %473 = vst.msk [vmem:[%s1080_s3 + $0x168] sm:$0xff] %vm74_vm0, %v372_v55  ;;  %v279_v56 = vpop.f32.mrb[14].mxu0  ;;  %v375_v57 = vpop.f32.mrb[14].mxu1 }
 0x104   :  { %v280_v58 = vadd.f32 %v279_v56, %v785_v62  ;;  %v376_v59 = vadd.f32 %v375_v57, %v785_v62  ;;  %v281_v60 = vpop.f32.mrb[15].mxu0  ;;  %v377_v61 = vpop.f32.mrb[15].mxu1 }
 0x105   :  { %v282_v0 = vadd.f32 %v281_v60, %v787_v63  ;;  %v378_v1 = vadd.f32 %v377_v61, %v787_v63 }
 0x106   :  { %442 = vst [vmem:[%s1080_s3 + $0x70] sm:$0xff] %v280_v58  ;;  %474 = vst [vmem:[%s1080_s3 + $0x170] sm:$0xff] %v376_v59 }
 0x107   :  { %443 = vst.msk [vmem:[%s1080_s3 + $0x78] sm:$0xff] %vm74_vm0, %v282_v0  ;;  %475 = vst.msk [vmem:[%s1080_s3 + $0x178] sm:$0xff] %vm74_vm0, %v378_v1  ;;  %v285_v2 = vpop.f32.mrb[16].mxu0  ;;  %v381_v3 = vpop.f32.mrb[16].mxu1 }
 0x108   :  { %v286_v4 = vadd.f32 %v285_v2, %v785_v62  ;;  %v382_v5 = vadd.f32 %v381_v3, %v785_v62  ;;  %v287_v6 = vpop.f32.mrb[17].mxu0  ;;  %v383_v7 = vpop.f32.mrb[17].mxu1 }
 0x109   :  { %v288_v8 = vadd.f32 %v287_v6, %v787_v63  ;;  %v384_v9 = vadd.f32 %v383_v7, %v787_v63 }
 0x10a   :  { %444 = vst [vmem:[%s1080_s3 + $0x80] sm:$0xff] %v286_v4  ;;  %476 = vst [vmem:[%s1080_s3 + $0x180] sm:$0xff] %v382_v5 }
 0x10b   :  { %445 = vst.msk [vmem:[%s1080_s3 + $0x88] sm:$0xff] %vm74_vm0, %v288_v8  ;;  %477 = vst.msk [vmem:[%s1080_s3 + $0x188] sm:$0xff] %vm74_vm0, %v384_v9  ;;  %v291_v10 = vpop.f32.mrb[18].mxu0  ;;  %v387_v11 = vpop.f32.mrb[18].mxu1 }
 0x10c   :  { %v292_v12 = vadd.f32 %v291_v10, %v785_v62  ;;  %v388_v13 = vadd.f32 %v387_v11, %v785_v62  ;;  %v293_v14 = vpop.f32.mrb[19].mxu0  ;;  %v389_v15 = vpop.f32.mrb[19].mxu1 }
 0x10d   :  { %v294_v16 = vadd.f32 %v293_v14, %v787_v63  ;;  %v390_v17 = vadd.f32 %v389_v15, %v787_v63 }
 0x10e   :  { %446 = vst [vmem:[%s1080_s3 + $0x90] sm:$0xff] %v292_v12  ;;  %478 = vst [vmem:[%s1080_s3 + $0x190] sm:$0xff] %v388_v13 }
 0x10f   :  { %447 = vst.msk [vmem:[%s1080_s3 + $0x98] sm:$0xff] %vm74_vm0, %v294_v16  ;;  %479 = vst.msk [vmem:[%s1080_s3 + $0x198] sm:$0xff] %vm74_vm0, %v390_v17  ;;  %v297_v18 = vpop.f32.mrb[20].mxu0  ;;  %v393_v19 = vpop.f32.mrb[20].mxu1 }
 0x110   :  { %v298_v20 = vadd.f32 %v297_v18, %v785_v62  ;;  %v394_v21 = vadd.f32 %v393_v19, %v785_v62  ;;  %v299_v22 = vpop.f32.mrb[21].mxu0  ;;  %v395_v23 = vpop.f32.mrb[21].mxu1 }
 0x111   :  { %v300_v24 = vadd.f32 %v299_v22, %v787_v63  ;;  %v396_v25 = vadd.f32 %v395_v23, %v787_v63 }
 0x112   :  { %448 = vst [vmem:[%s1080_s3 + $0xa0] sm:$0xff] %v298_v20  ;;  %480 = vst [vmem:[%s1080_s3 + $0x1a0] sm:$0xff] %v394_v21 }
 0x113   :  { %449 = vst.msk [vmem:[%s1080_s3 + $0xa8] sm:$0xff] %vm74_vm0, %v300_v24  ;;  %481 = vst.msk [vmem:[%s1080_s3 + $0x1a8] sm:$0xff] %vm74_vm0, %v396_v25  ;;  %v303_v26 = vpop.f32.mrb[22].mxu0  ;;  %v399_v27 = vpop.f32.mrb[22].mxu1 }
 0x114   :  { %v304_v28 = vadd.f32 %v303_v26, %v785_v62  ;;  %v400_v29 = vadd.f32 %v399_v27, %v785_v62  ;;  %v305_v30 = vpop.f32.mrb[23].mxu0  ;;  %v401_v31 = vpop.f32.mrb[23].mxu1 }
 0x115   :  { %v306_v32 = vadd.f32 %v305_v30, %v787_v63  ;;  %v402_v33 = vadd.f32 %v401_v31, %v787_v63 }
 0x116   :  { %450 = vst [vmem:[%s1080_s3 + $0xb0] sm:$0xff] %v304_v28  ;;  %482 = vst [vmem:[%s1080_s3 + $0x1b0] sm:$0xff] %v400_v29 }
 0x117   :  { %451 = vst.msk [vmem:[%s1080_s3 + $0xb8] sm:$0xff] %vm74_vm0, %v306_v32  ;;  %483 = vst.msk [vmem:[%s1080_s3 + $0x1b8] sm:$0xff] %vm74_vm0, %v402_v33  ;;  %v309_v34 = vpop.f32.mrb[24].mxu0  ;;  %v405_v35 = vpop.f32.mrb[24].mxu1 }
 0x118   :  { %v310_v36 = vadd.f32 %v309_v34, %v785_v62  ;;  %v406_v37 = vadd.f32 %v405_v35, %v785_v62  ;;  %v311_v38 = vpop.f32.mrb[25].mxu0  ;;  %v407_v39 = vpop.f32.mrb[25].mxu1 }
 0x119   :  { %v312_v40 = vadd.f32 %v311_v38, %v787_v63  ;;  %v408_v41 = vadd.f32 %v407_v39, %v787_v63 }
 0x11a   :  { %452 = vst [vmem:[%s1080_s3 + $0xc0] sm:$0xff] %v310_v36  ;;  %484 = vst [vmem:[%s1080_s3 + $0x1c0] sm:$0xff] %v406_v37 }
 0x11b   :  { %453 = vst.msk [vmem:[%s1080_s3 + $0xc8] sm:$0xff] %vm74_vm0, %v312_v40  ;;  %485 = vst.msk [vmem:[%s1080_s3 + $0x1c8] sm:$0xff] %vm74_vm0, %v408_v41  ;;  %v315_v42 = vpop.f32.mrb[26].mxu0  ;;  %v411_v43 = vpop.f32.mrb[26].mxu1 }
 0x11c   :  { %v316_v44 = vadd.f32 %v315_v42, %v785_v62  ;;  %v412_v45 = vadd.f32 %v411_v43, %v785_v62  ;;  %v317_v46 = vpop.f32.mrb[27].mxu0  ;;  %v413_v47 = vpop.f32.mrb[27].mxu1 }
 0x11d   :  { %v318_v48 = vadd.f32 %v317_v46, %v787_v63  ;;  %v414_v49 = vadd.f32 %v413_v47, %v787_v63 }
 0x11e   :  { %454 = vst [vmem:[%s1080_s3 + $0xd0] sm:$0xff] %v316_v44  ;;  %486 = vst [vmem:[%s1080_s3 + $0x1d0] sm:$0xff] %v412_v45 }
 0x11f   :  { %455 = vst.msk [vmem:[%s1080_s3 + $0xd8] sm:$0xff] %vm74_vm0, %v318_v48  ;;  %487 = vst.msk [vmem:[%s1080_s3 + $0x1d8] sm:$0xff] %vm74_vm0, %v414_v49  ;;  %v321_v50 = vpop.f32.mrb[28].mxu0  ;;  %v417_v51 = vpop.f32.mrb[28].mxu1 }
 0x120   :  { %v322_v52 = vadd.f32 %v321_v50, %v785_v62  ;;  %v418_v53 = vadd.f32 %v417_v51, %v785_v62  ;;  %v323_v54 = vpop.f32.mrb[29].mxu0  ;;  %v419_v55 = vpop.f32.mrb[29].mxu1 }
 0x121   :  { %v324_v56 = vadd.f32 %v323_v54, %v787_v63  ;;  %v420_v57 = vadd.f32 %v419_v55, %v787_v63 }
 0x122   :  { %456 = vst [vmem:[%s1080_s3 + $0xe0] sm:$0xff] %v322_v52  ;;  %488 = vst [vmem:[%s1080_s3 + $0x1e0] sm:$0xff] %v418_v53 }
 0x123   :  { %457 = vst.msk [vmem:[%s1080_s3 + $0xe8] sm:$0xff] %vm74_vm0, %v324_v56  ;;  %489 = vst.msk [vmem:[%s1080_s3 + $0x1e8] sm:$0xff] %vm74_vm0, %v420_v57  ;;  %v327_v58 = vpop.f32.mrb[30].mxu0  ;;  %v423_v59 = vpop.f32.mrb[30].mxu1 }
 0x124   :  { %v328_v60 = vadd.f32 %v327_v58, %v785_v62  ;;  %v424_v61 = vadd.f32 %v423_v59, %v785_v62  ;;  %v329_v0 = vpop.f32.mrb[31].mxu0  ;;  %v425_v1 = vpop.f32.mrb[31].mxu1 }
 0x125   :  { %v330_v2 = vadd.f32 %v329_v0, %v787_v63  ;;  %v426_v3 = vadd.f32 %v425_v1, %v787_v63 }
 0x126   :  { %458 = vst [vmem:[%s1080_s3 + $0xf0] sm:$0xff] %v328_v60  ;;  %490 = vst [vmem:[%s1080_s3 + $0x1f0] sm:$0xff] %v424_v61 }
 0x127   :  { %459 = vst.msk [vmem:[%s1080_s3 + $0xf8] sm:$0xff] %vm74_vm0, %v330_v2  ;;  %491 = vst.msk [vmem:[%s1080_s3 + $0x1f8] sm:$0xff] %vm74_vm0, %v426_v3 }

</bundles_post_ra>
